<compile_context>
chip_gen: v6e
topology: v6e:2x2x1
jax: 0.10.0
libtpu: 0.0.40
codegen_flags: <defaults>
</compile_context>

<pallas_src>
import functools

import numpy as np
import jax
import jax.numpy as jnp
from jax.experimental import pallas as pl
from jax.experimental.pallas import tpu as pltpu

# LIF parameters (match the PyTorch defaults).
LIF_PARAMS = {
    "alpha": 0.3,
    "beta": 0.0,
    "theta": 0.5,
    "v_0": 0.0,
    "I_e": 0.6,
    "v_init": 0.0,
}

_LANES = 128
# Below this many elements a single fused XLA expression beats a pallas launch.
_SMALL_INPUT_ELEMS = 64 * 1024
# If the VMEM-capacity query fails, assume the smallest generation (v7x, 64 MiB).
_FALLBACK_VMEM_BYTES = 64 * 1024 * 1024


def _lif_kernel(x_ref, v_ref, fire_ref, v_new_ref, *, alpha, beta, theta, v_0, I_e):
    v_temp = v_ref[...] + x_ref[...] + I_e
    spike = (v_temp - theta) > 0.0
    fire_ref[...] = spike.astype(fire_ref.dtype)                # exact 0/1
    v_new_ref[...] = alpha * jnp.where(spike, v_0, v_temp) + beta


def _lif_reference(x, v, p=LIF_PARAMS):
    """Pure-JAX reference (also the fused-XLA fallback path)."""
    v_temp = v + x + p["I_e"]
    fire = ((v_temp - p["theta"]) > 0.0).astype(jnp.float32)
    v_new = p["alpha"] * (fire * p["v_0"] + (1.0 - fire) * v_temp) + p["beta"]
    return fire, v_new


def _vmem_capacity_bytes():
    try:
        cap = getattr(pltpu.get_tpu_info(), "vmem_capacity_bytes", None)
        if cap:
            return int(cap)
    except Exception:
        pass
    return _FALLBACK_VMEM_BYTES


def _choose_cols(n):
    """Widest lane-dense slab width (multiple of 128) that divides n."""
    for cols in (1024, 512, 256, _LANES):
        if n % cols == 0 and n // cols >= 8:
            return cols
    for cols in (1024, 512, 256, _LANES):
        if n % cols == 0:
            return cols
    return None  # not reshapeable without padding -> fused-XLA fallback


def lif_forward(x, v, lif_params=LIF_PARAMS, *, fire_dtype=jnp.float32,
                force_pallas=False):
    """One LIF step. x, v: same shape (e.g. NCHW), float-like.

    Returns (fire, v_new); fire in `fire_dtype`, v_new float32.
    """
    assert x.shape == v.shape
    orig_shape = x.shape
    n = int(np.prod(orig_shape)) if orig_shape else 1

    x = x.astype(jnp.float32)
    v = v.astype(jnp.float32)

    cols = _choose_cols(n)
    use_pallas = (cols is not None) and (force_pallas or n >= _SMALL_INPUT_ELEMS)
    if not use_pallas:
        # Tiny or non-128-divisible inputs: the fused XLA expression is already
        # HBM-roofline for this elementwise op and avoids launch/padding cost.
        fire, v_new = _lif_reference(x, v, lif_params)
        return fire.astype(fire_dtype), v_new

    rows = n // cols
    x2 = x.reshape(rows, cols)
    v2 = v.reshape(rows, cols)

    # --- generation-aware block sizing -------------------------------------
    vmem_cap = _vmem_capacity_bytes()
    # One f32 input block ~= VMEM/16 bytes: 4 MiB on v7x (64 MiB VMEM),
    # 8 MiB on v5e/v6e (128 MiB VMEM).
    target_block_elems = max(256 * 1024, (vmem_cap // 16) // 4)
    tile_rows = (target_block_elems // cols) // 32 * 32   # mult of 32: legal for
    tile_rows = max(tile_rows, 32)                         # f32 / bf16 / int8 fire
    if tile_rows >= rows:
        tile_rows = rows                                   # full-array block
    grid = (pl.cdiv(rows, tile_rows),)

    # Double-buffered footprint: x, v, v_new (f32) + fire (fire_dtype) per step.
    fire_itemsize = np.dtype(fire_dtype).itemsize
    step_bytes = tile_rows * cols * (4 + 4 + 4 + fire_itemsize)
    footprint = 2 * step_bytes
    vmem_limit = int(min(0.9 * vmem_cap, max(footprint + (4 << 20), 32 << 20)))

    p = lif_params
    kernel = functools.partial(
        _lif_kernel,
        alpha=float(p["alpha"]),
        beta=float(p["beta"]),
        theta=float(p["theta"]),
        v_0=float(p["v_0"]),
        I_e=float(p["I_e"]),
    )

    spec = pl.BlockSpec((tile_rows, cols), lambda i: (i, 0))

    # TODO(synk): on v7x, verify the 1-D grid is actually split across both
    # TensorCores; if a profile shows a single TC streaming the slab, switch the
    # axis to pltpu.CORE_PARALLEL (no-op concern on single-TC v5e/v6e).
    fire2, v_new2 = pl.pallas_call(
        kernel,
        out_shape=(
            jax.ShapeDtypeStruct((rows, cols), fire_dtype),   # fire (emitted directly)
            jax.ShapeDtypeStruct((rows, cols), jnp.float32),  # v_new
        ),
        grid_spec=pltpu.PrefetchScalarGridSpec(
            num_scalar_prefetch=0,
            grid=grid,
            in_specs=[spec, spec],
            out_specs=[spec, spec],
        ),
        compiler_params=pltpu.CompilerParams(
            dimension_semantics=("parallel",),
            vmem_limit_bytes=vmem_limit,
        ),
    )(x2, v2)

    fire = fire2.reshape(orig_shape)
    v_new = v_new2.reshape(orig_shape)
    return fire, v_new


if __name__ == "__main__":
    key = jax.random.PRNGKey(0)
    k1, k2 = jax.random.split(key)

    # Small NCHW activation map, matching the module's typical use.
    x_small = jax.random.normal(k1, (2, 4, 16, 16), dtype=jnp.float32)
    v_small = jnp.zeros_like(x_small)          # reset(): v = zeros_like(x)

    # Force the Pallas path so the kernel itself is exercised at small size.
    fire, v_new = lif_forward(x_small, v_small, force_pallas=True)
    fire = jax.block_until_ready(fire)
    v_new = jax.block_until_ready(v_new)

    fire_ref, v_ref = _lif_reference(x_small, v_small)
    assert fire.shape == x_small.shape and v_new.shape == x_small.shape
    assert fire.dtype == jnp.float32
    assert jnp.allclose(fire, fire_ref, atol=1e-6), "fire mismatch (small)"
    assert jnp.allclose(v_new, v_ref, atol=1e-6), "v_new mismatch (small)"

    # Default (auto) path on the same small input exercises the XLA fallback.
    fire_a, v_new_a = lif_forward(x_small, v_small)
    fire_a = jax.block_until_ready(fire_a)
    v_new_a = jax.block_until_ready(v_new_a)
    assert jnp.allclose(fire_a, fire_ref, atol=1e-6), "fire mismatch (auto)"
    assert jnp.allclose(v_new_a, v_ref, atol=1e-6), "v_new mismatch (auto)"

    # Larger shape to exercise the large-block / multi-step grid path.
    x_big = jax.random.normal(k2, (32, 32, 64, 64), dtype=jnp.float32)
    v_big = jnp.zeros_like(x_big)
    fire_b, v_new_b = lif_forward(x_big, v_big, force_pallas=True)
    fire_b = jax.block_until_ready(fire_b)
    v_new_b = jax.block_until_ready(v_new_b)

    fire_ref_b, v_ref_b = _lif_reference(x_big, v_big)
    assert jnp.allclose(fire_b, fire_ref_b, atol=1e-6), "fire mismatch (big)"
    assert jnp.allclose(v_new_b, v_ref_b, atol=1e-6), "v_new mismatch (big)"

    print("KERNEL_OK")
</pallas_src>

<mosaic_0001>
module attributes {stable_mosaic.version = 11 : i64} {
  func.func @_lif_kernel(%arg0: i32, %arg1: memref<8x256xf32, #tpu.memory_space<vmem>>, %arg2: memref<8x256xf32, #tpu.memory_space<vmem>>, %arg3: memref<8x256xf32, #tpu.memory_space<vmem>>, %arg4: memref<8x256xf32, #tpu.memory_space<vmem>>) attributes {dimension_semantics = [#tpu.dimension_semantics<parallel>], iteration_bounds = array<i64: 1>, scalar_prefetch = 0 : i64, scratch_operands = 0 : i64, tpu.core_type = #tpu.core_type<tc>, window_params = [{transform_indices = @transform_0, window_bounds = array<i64: 8, 256>}, {transform_indices = @transform_1, window_bounds = array<i64: 8, 256>}, {transform_indices = @transform_2, window_bounds = array<i64: 8, 256>}, {transform_indices = @transform_3, window_bounds = array<i64: 8, 256>}]} {
    %c0 = arith.constant 0 : index
    %c0_0 = arith.constant 0 : index
    %0 = vector.load %arg2[%c0, %c0_0] : memref<8x256xf32, #tpu.memory_space<vmem>>, vector<8x256xf32>
    %c0_1 = arith.constant 0 : index
    %c0_2 = arith.constant 0 : index
    %1 = vector.load %arg1[%c0_1, %c0_2] : memref<8x256xf32, #tpu.memory_space<vmem>>, vector<8x256xf32>
    %2 = arith.addf %0, %1 : vector<8x256xf32>
    %cst = arith.constant 6.000000e-01 : f32
    %3 = vector.broadcast %cst : f32 to vector<8x256xf32>
    %4 = arith.addf %2, %3 : vector<8x256xf32>
    %cst_3 = arith.constant 5.000000e-01 : f32
    %5 = vector.broadcast %cst_3 : f32 to vector<8x256xf32>
    %6 = arith.subf %4, %5 : vector<8x256xf32>
    %cst_4 = arith.constant 0.000000e+00 : f32
    %7 = vector.broadcast %cst_4 : f32 to vector<8x256xf32>
    %8 = arith.cmpf ogt, %6, %7 : vector<8x256xf32>
    %9 = arith.extui %8 : vector<8x256xi1> to vector<8x256xi32>
    %10 = arith.sitofp %9 : vector<8x256xi32> to vector<8x256xf32>
    %c0_5 = arith.constant 0 : index
    %c0_6 = arith.constant 0 : index
    %11 = vector.load %arg3[%c0_5, %c0_6] : memref<8x256xf32, #tpu.memory_space<vmem>>, vector<8x256xf32>
    tpu.vector_store %arg3[%c0_5, %c0_6], %10 {strides = array<i32>} : memref<8x256xf32, #tpu.memory_space<vmem>>, vector<8x256xf32>,
    %cst_7 = arith.constant 0.000000e+00 : f32
    %12 = vector.broadcast %cst_7 : f32 to vector<8x256xf32>
    %13 = arith.select %8, %12, %4 : vector<8x256xi1>, vector<8x256xf32>
    %cst_8 = arith.constant 3.000000e-01 : f32
    %14 = vector.broadcast %cst_8 : f32 to vector<8x256xf32>
    %15 = arith.mulf %14, %13 : vector<8x256xf32>
    %cst_9 = arith.constant 0.000000e+00 : f32
    %16 = vector.broadcast %cst_9 : f32 to vector<8x256xf32>
    %17 = arith.addf %15, %16 : vector<8x256xf32>
    %c0_10 = arith.constant 0 : index
    %c0_11 = arith.constant 0 : index
    %18 = vector.load %arg4[%c0_10, %c0_11] : memref<8x256xf32, #tpu.memory_space<vmem>>, vector<8x256xf32>
    tpu.vector_store %arg4[%c0_10, %c0_11], %17 {strides = array<i32>} : memref<8x256xf32, #tpu.memory_space<vmem>>, vector<8x256xf32>,
    return
  }
  func.func @transform_0(%arg0: i32) -> (i32, i32) {
    %c0_i32 = arith.constant 0 : i32
    %c0_i32_0 = arith.constant 0 : i32
    return %arg0, %c0_i32 : i32, i32
  }
  func.func @transform_1(%arg0: i32) -> (i32, i32) {
    %c0_i32 = arith.constant 0 : i32
    %c0_i32_0 = arith.constant 0 : i32
    return %arg0, %c0_i32 : i32, i32
  }
  func.func @transform_2(%arg0: i32) -> (i32, i32) {
    %c0_i32 = arith.constant 0 : i32
    %c0_i32_0 = arith.constant 0 : i32
    return %arg0, %c0_i32 : i32, i32
  }
  func.func @transform_3(%arg0: i32) -> (i32, i32) {
    %c0_i32 = arith.constant 0 : i32
    %c0_i32_0 = arith.constant 0 : i32
    return %arg0, %c0_i32 : i32, i32
  }
}

</mosaic_0001>

<bundles_post_ra>
// kernel: tpu_custom_call.1
= control target key start
LH: loop header
LB: loop body
LE: loop exit
PB: predicated region body
PF: predicated region fallthrough
CT: control target
= control target key end

     0   :  { %9 = vsyncpa [#allocation3], 0  ;;  %s229_s0 = inlined_call_operand.hbm [shape: f32[8,256], index: 0, kind: input, shape index: {}]   ;;  %s230_s1 = inlined_call_operand.hbm [shape: f32[8,256], index: 1, kind: input, shape index: {}]   ;;  %s231_s2 = inlined_call_operand.hbm [shape: f32[8,256], index: 2, kind: output, shape index: {0}]   ;;  %s232_s3 = inlined_call_operand.hbm [shape: f32[8,256], index: 3, kind: output, shape index: {1}]  }
   0x1   :  { %10 = vsyncpa [#allocation6], 0 }
   0x2   :  { %11 = vsyncpa [#allocation4], 0 }
   0x3   :  { %12 = vsyncpa [#allocation9], 0  ;;  %s192_s12 = smov [#allocation2]   ;;  %s193_s14 = smov [#allocation5]  }
   0x4   :  { %s19_s13 = sshll.u32 %s192_s12, 4  ;;  %s29_s15 = sshll.u32 %s193_s14, 4  ;;  %s20_s13 = int_to_ptr.vmem [resolvable:$true] %s19_s13  ;;  %s30_s15 = int_to_ptr.vmem [resolvable:$true] %s29_s15 }
   0x5   :  { %s112_s16 = scalar_lea.vmem %s20_s13, 256  ;;  %p117_p1 = scmp.lt.s32.totalorder %s20_s13, %s20_s13 }
   0x6   :  { %p113_p0 = scmp.ne.s32.totalorder %s20_s13, %s112_s16  ;;  %p118_p2 = scmp.lt.s32.totalorder %s112_s16, %s112_s16 }
   0x8   :  { %p119_p3 = por %p118_p2, %p117_p1 }
   0xa   :  { %p120_p4 = pnand %p119_p3, %p113_p0 }
   0xc   :  { %123 = shalt.err (!%p120_p4)
}
   0xd   :  { %22 = dma.hbm_to_vmem [thread:$0]  %s229_s0, 256, %s20_s13, [#allocation3]  }
   0xe   :  { %s132_s19 = scalar_lea.vmem %s30_s15, 256  ;;  %p137_p6 = scmp.lt.s32.totalorder %s30_s15, %s30_s15 }
   0xf   :  { %p133_p5 = scmp.ne.s32.totalorder %s30_s15, %s132_s19  ;;  %p138_p7 = scmp.lt.s32.totalorder %s132_s19, %s132_s19 }
  0x11   :  { %p139_p8 = por %p138_p7, %p137_p6 }
  0x13   :  { %p140_p9 = pnand %p139_p8, %p133_p5 }
  0x15   :  { %143 = shalt.err (!%p140_p9)
}
  0x16   :  { %32 = dma.hbm_to_vmem [thread:$0]  %s230_s1, 256, %s30_s15, [#allocation6]  }
  0x17   :  { %184 = dma.done.wait [#allocation3], 256  }
  0x18   :  { %185 = vsyncadd [#allocation3], 4294967040 }
  0x19   :  { %186 = dma.done.wait [#allocation6], 256  }
  0x1a   :  { %187 = vsyncadd [#allocation6], 4294967040  ;;  %v39_v0 = vld [vmem:[#allocation5] sm:$0xff]  ;;  %v41_v1 = vld [vmem:[#allocation2] sm:$0xff]  ;;  %s194_s0 = smov [#allocation7]   ;;  %s195_s23 = smov [#allocation8]  }
  0x1b   :  { %v40_v2 = vld [vmem:[#allocation5 + $0x8] sm:$0xff]  ;;  %v43_v3 = vadd.f32 %v41_v1, %v39_v0  ;;  %v42_v4 = vld [vmem:[#allocation2 + $0x8] sm:$0xff]  ;;  %s71_s22 = sshll.u32 %s194_s0, 4  ;;  %s81_s24 = sshll.u32 %s195_s23, 4  ;;  %v196_v10 = vmov 0.0   ;;  %s72_s22 = int_to_ptr.vmem [resolvable:$true] %s71_s22  ;;  %s82_s24 = int_to_ptr.vmem [resolvable:$true] %s81_s24 }
  0x1c   :  { %v44_v5 = vadd.f32 %v42_v4, %v40_v2  ;;  %s144_s1 = scalar_lea.vmem %s72_s22, 256  ;;  %p149_p11 = scmp.lt.s32.totalorder %s72_s22, %s72_s22 }
  0x1d   :  { %v45_v6 = vadd.f32 0.6, %v43_v3  ;;  %p145_p10 = scmp.ne.s32.totalorder %s72_s22, %s144_s1  ;;  %p150_p12 = scmp.lt.s32.totalorder %s144_s1, %s144_s1 }
  0x1e   :  { %v46_v7 = vadd.f32 0.6, %v44_v5 }
  0x1f   :  { %v95_v8 = vadd.f32 -0.5, %v45_v6  ;;  %p151_p13 = por %p150_p12, %p149_p11 }
  0x20   :  { %v96_v9 = vadd.f32 -0.5, %v46_v7 }
  0x21   :  { %vm49_vm0 = vcmp.gt.f32.partialorder %v95_v8, 0.0  ;;  %p152_p0 = pnand %p151_p13, %p145_p10 }
  0x22   :  { %v97_v11 = vsel %vm49_vm0, 1.0, %v196_v10  ;;  %vm50_vm1 = vcmp.gt.f32.partialorder %v96_v9, 0.0  ;;  %v57_v12 = vsel %vm49_vm0, 0.0, %v45_v6 }
  0x23   :  { %55 = vst [vmem:[#allocation7] sm:$0xff] %v97_v11  ;;  %v98_v13 = vsel %vm50_vm1, 1.0, %v196_v10  ;;  %v59_v14 = vmul.f32 0.3, %v57_v12  ;;  %v58_v15 = vsel %vm50_vm1, 0.0, %v46_v7 }
  0x24   :  { %56 = vst [vmem:[#allocation7 + $0x8] sm:$0xff] %v98_v13  ;;  %v60_v16 = vmul.f32 0.3, %v58_v15 }
  0x25   :  { %63 = vst [vmem:[#allocation8] sm:$0xff] %v59_v14 }
  0x26   :  { %155 = shalt.err (!%p152_p0)
}
  0x27   :  { %74 = dma.vmem_to_hbm [thread:$0]  %s72_s22, 256, %s231_s2, [#allocation4]   ;;  %64 = vst [vmem:[#allocation8 + $0x8] sm:$0xff] %v60_v16 }
  0x28   :  { %s164_s27 = scalar_lea.vmem %s82_s24, 256  ;;  %p169_p2 = scmp.lt.s32.totalorder %s82_s24, %s82_s24 }
  0x29   :  { %p165_p1 = scmp.ne.s32.totalorder %s82_s24, %s164_s27  ;;  %p170_p3 = scmp.lt.s32.totalorder %s164_s27, %s164_s27 }
  0x2b   :  { %p171_p4 = por %p170_p3, %p169_p2 }
  0x2d   :  { %p172_p5 = pnand %p171_p4, %p165_p1 }
  0x2f   :  { %175 = shalt.err (!%p172_p5)
}
  0x30   :  { %84 = dma.vmem_to_hbm [thread:$0]  %s82_s24, 256, %s232_s3, [#allocation9]  }
  0x31   :  { %188 = dma.done.wait [#allocation4], 256  }
  0x32   :  { %189 = vsyncadd [#allocation4], 4294967040 }
  0x33   :  { %190 = dma.done.wait [#allocation9], 256  }
  0x34   :  { %191 = vsyncadd [#allocation9], 4294967040 }
  0x35   :  { %91 = vsyncpa [#allocation3], 1 }
  0x36   :  { %92 = vsyncpa [#allocation6], 1 }
  0x37   :  { %93 = vsyncpa [#allocation4], 1 }
  0x38   :  { %94 = vsyncpa [#allocation9], 1 }

</bundles_post_ra>
